<compile_context>
chip_gen: v6e
topology: v6e:2x2x1
jax: 0.10.0
libtpu: 0.0.40
codegen_flags: <defaults>
</compile_context>

<pallas_src>
import functools

import jax
import jax.numpy as jnp
import numpy as np
from jax.experimental import pallas as pl
from jax.experimental.pallas import tpu as pltpu


def _round_up(x, m):
    return ((x + m - 1) // m) * m


def _cdiv(a, b):
    return (a + b - 1) // b


def _combined_loss_kernel(logits_ref, tgt_ref, out_ref, acc_ref, *,
                          alpha, beta, thegma, batch, num_classes):
    i = pl.program_id(0)
    nsteps = pl.num_programs(0)

    @pl.when(i == 0)
    def _init():
        acc_ref[0] = 0.0   # sum (alpha*onehot + thegma*penalties) * log_probs
        acc_ref[1] = 0.0   # sum logits
        acc_ref[2] = 0.0   # sum logits^2
        acc_ref[3] = 0.0   # sum target logits (= sum onehot * logits)

    logits = logits_ref[...].astype(jnp.float32)              # (TB, C), cast in-kernel
    tgt = tgt_ref[...]                                         # (TB, 1) int32, -1 = padding
    tb, c = logits.shape

    valid_f = (tgt >= 0).astype(jnp.float32)                   # (TB, 1)

    # In-kernel one-hot and analytic hierarchical penalties (no HBM matrices).
    class_ids = jax.lax.broadcasted_iota(jnp.int32, (tb, c), 1)
    onehot = (class_ids == tgt).astype(jnp.float32)            # rows with tgt=-1 -> all zero
    diff = jnp.abs(class_ids.astype(jnp.float32) - tgt.astype(jnp.float32))
    penalties = jnp.exp(-jnp.float32(thegma) * diff)           # (TB, C) on VPU/EUP

    # Numerically-stable log_softmax along the class (lane) dim.
    m = jnp.max(logits, axis=-1, keepdims=True)
    shifted = logits - m
    lse = m + jnp.log(jnp.sum(jnp.exp(shifted), axis=-1, keepdims=True))
    log_probs = logits - lse                                   # (TB, C)

    # Fused CE + SCL weighting (single multiply + single reduction).
    w = (jnp.float32(alpha) * onehot + jnp.float32(thegma) * penalties) * valid_f
    acc_ref[0] += jnp.sum(w * log_probs)

    # Closed-form Pearson running sums (padded rows masked out).
    logits_m = logits * valid_f
    acc_ref[1] += jnp.sum(logits_m)
    acc_ref[2] += jnp.sum(logits_m * logits_m)
    acc_ref[3] += jnp.sum(onehot * logits)

    @pl.when(i == nsteps - 1)
    def _finalize():
        bf = jnp.float32(batch)
        cf = jnp.float32(num_classes)
        n_flat = bf * cf

        s_wlogp = acc_ref[0]
        s_l = acc_ref[1]
        s_l2 = acc_ref[2]
        s_tl = acc_ref[3]

        # alpha*CE + thegma*SCL  ==  -(1/B) * sum(W * log_probs)
        ce_plus_scl = -s_wlogp / bf

        # Pearson:  num = sum(logits*onehot) - sum(logits)/C
        #           sum(lc^2) = sum(l^2) - sum(l)^2/(B*C),  sum(tc^2) = B*(1 - 1/C)
        num = s_tl - s_l / cf
        var_l = s_l2 - (s_l * s_l) / n_flat
        var_t = bf * (1.0 - 1.0 / cf)
        corr = num * jax.lax.rsqrt(var_l) * jax.lax.rsqrt(var_t)
        pearson_loss = -corr

        out_ref[0, 0] = ce_plus_scl + jnp.float32(beta) * pearson_loss


def combined_loss(logits, targets, *, num_classes, alpha, beta, thegma,
                  block_b=None):
    """Pallas implementation of CombinedLoss.forward. Returns a scalar."""
    b, c = logits.shape
    assert c == num_classes

    if block_b is None:
        # Keep the double-buffered logits tile well under the default scoped VMEM
        # limit on every generation (v5e 16MiB / v6e 32MiB / v7x 32MiB).
        budget = 8 * 1024 * 1024
        rows = budget // (2 * c * max(int(logits.dtype.itemsize), 4))
        block_b = max(8, min(1024, (rows // 8) * 8))

    # Balance rows across grid steps so padding is at most (nsteps*8 - 1) rows,
    # instead of rounding B up to a fixed tile (avoids e.g. 1025 -> 2048 padding).
    nsteps = max(1, _cdiv(b, int(block_b)))
    tb = _round_up(_cdiv(b, nsteps), 8)
    b_pad = tb * nsteps

    targets = targets.astype(jnp.int32)
    if b_pad != b:
        logits = jnp.pad(logits, ((0, b_pad - b), (0, 0)))
        targets = jnp.pad(targets, (0, b_pad - b), constant_values=-1)
    targets_2d = targets.reshape(b_pad, 1)

    kernel = functools.partial(
        _combined_loss_kernel,
        alpha=float(alpha), beta=float(beta), thegma=float(thegma),
        batch=b, num_classes=c)

    # TODO(synk): on v7x, split the batch grid axis across the 2 TensorCores
    # ("parallel" outer axis with per-core partial sums combined in the wrapper).
    out = pl.pallas_call(
        kernel,
        out_shape=jax.ShapeDtypeStruct((1, 1), jnp.float32),
        grid_spec=pltpu.PrefetchScalarGridSpec(
            num_scalar_prefetch=0,
            grid=(nsteps,),
            in_specs=[
                pl.BlockSpec((tb, c), lambda i: (i, 0)),   # logits tile (native dtype)
                pl.BlockSpec((tb, 1), lambda i: (i, 0)),   # int32 targets column
            ],
            out_specs=pl.BlockSpec((1, 1), lambda i: (0, 0),
                                   memory_space=pltpu.MemorySpace.SMEM),
            scratch_shapes=[pltpu.SMEM((4,), jnp.float32)],
        ),
        compiler_params=pltpu.CompilerParams(
            dimension_semantics=("arbitrary",)),
    )(logits, targets_2d)
    return out[0, 0]


def _reference_combined_loss(logits, targets, *, num_classes, alpha, beta, thegma):
    """Pure-JAX reference mirroring the PyTorch module, for a sanity check."""
    idx = jnp.arange(num_classes, dtype=jnp.float32)
    pm = jnp.exp(-thegma * jnp.abs(idx[None, :] - idx[:, None]))
    log_probs = jax.nn.log_softmax(logits, axis=1)
    ce = -jnp.mean(log_probs[jnp.arange(logits.shape[0]), targets])
    penalties = pm[targets, :]
    scl = -jnp.mean(jnp.sum(penalties * log_probs, axis=1))
    lf = logits.reshape(-1)
    tf = jax.nn.one_hot(targets, num_classes, dtype=jnp.float32).reshape(-1)
    lc = lf - lf.mean()
    tc = tf - tf.mean()
    corr = jnp.sum(lc * tc) / (jnp.sqrt(jnp.sum(lc ** 2)) * jnp.sqrt(jnp.sum(tc ** 2)))
    return alpha * ce + thegma * scl + beta * (-corr)


if __name__ == "__main__":
    num_cls = 9            # num_classes[0] from the reference script
    alpha, beta, thegma = 0.5, 0.3, 0.2
    batch = 24             # small, but with block_b=8 it exercises a 3-step grid

    key = jax.random.PRNGKey(0)
    k_logits, k_tgt = jax.random.split(key)
    logits = jax.random.normal(k_logits, (batch, num_cls), dtype=jnp.float32)
    targets = jax.random.randint(k_tgt, (batch,), 0, num_cls, dtype=jnp.int32)

    ref = _reference_combined_loss(logits, targets, num_classes=num_cls,
                                   alpha=alpha, beta=beta, thegma=thegma)
    ref = jax.block_until_ready(ref)

    # Multi-step grid path (3 tiles of 8 rows).
    loss_tiled = combined_loss(logits, targets, num_classes=num_cls,
                               alpha=alpha, beta=beta, thegma=thegma, block_b=8)
    loss_tiled = jax.block_until_ready(loss_tiled)
    assert np.allclose(np.asarray(loss_tiled), np.asarray(ref),
                       rtol=1e-5, atol=1e-4), (loss_tiled, ref)

    # Default (single-step, auto tile-size) path.
    loss_single = combined_loss(logits, targets, num_classes=num_cls,
                                alpha=alpha, beta=beta, thegma=thegma)
    loss_single = jax.block_until_ready(loss_single)
    assert np.allclose(np.asarray(loss_single), np.asarray(ref),
                       rtol=1e-5, atol=1e-4), (loss_single, ref)

    print("KERNEL_OK")
</pallas_src>

<mosaic_0001>
module attributes {stable_mosaic.version = 11 : i64} {
  func.func @_combined_loss_kernel(%arg0: i32, %arg1: memref<8x9xf32, #tpu.memory_space<vmem>>, %arg2: memref<8x1xi32, #tpu.memory_space<vmem>>, %arg3: memref<1x1xf32, #tpu.memory_space<smem>>, %arg4: memref<4xf32, #tpu.memory_space<smem>>) attributes {dimension_semantics = [#tpu.dimension_semantics<arbitrary>], iteration_bounds = array<i64: 3>, scalar_prefetch = 0 : i64, scratch_operands = 1 : i64, tpu.core_type = #tpu.core_type<tc>, window_params = [{transform_indices = @transform_0, window_bounds = array<i64: 8, 9>}, {transform_indices = @transform_1, window_bounds = array<i64: 8, 1>}, {transform_indices = @transform_2, window_bounds = array<i64: 1, 1>}]} {
    %c0_i32 = arith.constant 0 : i32
    %0 = arith.cmpi eq, %arg0, %c0_i32 : i32
    %1 = arith.extui %0 : i1 to i32
    %c0_i32_0 = arith.constant 0 : i32
    %2 = arith.cmpi ne, %1, %c0_i32_0 : i32
    scf.if %2 {
      %cst_20 = arith.constant 0.000000e+00 : f32
      %c0_21 = arith.constant 0 : index
      %77 = memref.load %arg4[%c0_21] : memref<4xf32, #tpu.memory_space<smem>>
      memref.store %cst_20, %arg4[%c0_21] : memref<4xf32, #tpu.memory_space<smem>>
      %cst_22 = arith.constant 0.000000e+00 : f32
      %c1_23 = arith.constant 1 : index
      %78 = memref.load %arg4[%c1_23] : memref<4xf32, #tpu.memory_space<smem>>
      memref.store %cst_22, %arg4[%c1_23] : memref<4xf32, #tpu.memory_space<smem>>
      %cst_24 = arith.constant 0.000000e+00 : f32
      %c2_25 = arith.constant 2 : index
      %79 = memref.load %arg4[%c2_25] : memref<4xf32, #tpu.memory_space<smem>>
      memref.store %cst_24, %arg4[%c2_25] : memref<4xf32, #tpu.memory_space<smem>>
      %cst_26 = arith.constant 0.000000e+00 : f32
      %c3_27 = arith.constant 3 : index
      %80 = memref.load %arg4[%c3_27] : memref<4xf32, #tpu.memory_space<smem>>
      memref.store %cst_26, %arg4[%c3_27] : memref<4xf32, #tpu.memory_space<smem>>
    } else {
    }
    %c0 = arith.constant 0 : index
    %c0_1 = arith.constant 0 : index
    %3 = vector.load %arg1[%c0, %c0_1] : memref<8x9xf32, #tpu.memory_space<vmem>>, vector<8x9xf32>
    %c0_2 = arith.constant 0 : index
    %c0_3 = arith.constant 0 : index
    %4 = vector.load %arg2[%c0_2, %c0_3] : memref<8x1xi32, #tpu.memory_space<vmem>>, vector<8x1xi32>
    %c0_i32_4 = arith.constant 0 : i32
    %5 = vector.broadcast %c0_i32_4 : i32 to vector<8x1xi32>
    %6 = arith.cmpi sge, %4, %5 : vector<8x1xi32>
    %7 = arith.extui %6 : vector<8x1xi1> to vector<8x1xi32>
    %8 = arith.sitofp %7 : vector<8x1xi32> to vector<8x1xf32>
    %9 = tpu.iota {dimensions = array<i32: 1>} : vector<8x9xi32>
    %10 = vector.broadcast %4 : vector<8x1xi32> to vector<8x9xi32>
    %11 = arith.cmpi eq, %9, %10 : vector<8x9xi32>
    %12 = arith.extui %11 : vector<8x9xi1> to vector<8x9xi32>
    %13 = arith.sitofp %12 : vector<8x9xi32> to vector<8x9xf32>
    %14 = arith.sitofp %9 : vector<8x9xi32> to vector<8x9xf32>
    %15 = arith.sitofp %4 : vector<8x1xi32> to vector<8x1xf32>
    %16 = vector.broadcast %15 : vector<8x1xf32> to vector<8x9xf32>
    %17 = arith.subf %14, %16 : vector<8x9xf32>
    %18 = math.absf %17 : vector<8x9xf32>
    %cst = arith.constant 0.000000e+00 : f32
    %cst_5 = arith.constant 2.000000e-01 : f32
    %19 = arith.subf %cst, %cst_5 : f32
    %20 = vector.broadcast %19 : f32 to vector<8x9xf32>
    %21 = arith.mulf %20, %18 : vector<8x9xf32>
    %22 = math.exp %21 : vector<8x9xf32>
    %cst_6 = arith.constant dense<0xFF800000> : vector<8xf32>
    %23 = vector.multi_reduction <maximumf>, %3, %cst_6 [1] : vector<8x9xf32> to vector<8xf32>
    %24 = vector.shape_cast %23 : vector<8xf32> to vector<8x1xf32>
    %25 = vector.broadcast %24 : vector<8x1xf32> to vector<8x9xf32>
    %26 = arith.subf %3, %25 : vector<8x9xf32>
    %27 = math.exp %26 : vector<8x9xf32>
    %cst_7 = arith.constant dense<0.000000e+00> : vector<8xf32>
    %28 = vector.multi_reduction <add>, %27, %cst_7 [1] : vector<8x9xf32> to vector<8xf32>
    %29 = vector.shape_cast %28 : vector<8xf32> to vector<8x1xf32>
    %30 = math.log %29 : vector<8x1xf32>
    %31 = arith.addf %24, %30 : vector<8x1xf32>
    %32 = vector.broadcast %31 : vector<8x1xf32> to vector<8x9xf32>
    %33 = arith.subf %3, %32 : vector<8x9xf32>
    %cst_8 = arith.constant 5.000000e-01 : f32
    %34 = vector.broadcast %cst_8 : f32 to vector<8x9xf32>
    %35 = arith.mulf %34, %13 : vector<8x9xf32>
    %cst_9 = arith.constant 2.000000e-01 : f32
    %36 = vector.broadcast %cst_9 : f32 to vector<8x9xf32>
    %37 = arith.mulf %36, %22 : vector<8x9xf32>
    %38 = arith.addf %35, %37 : vector<8x9xf32>
    %39 = vector.broadcast %8 : vector<8x1xf32> to vector<8x9xf32>
    %40 = arith.mulf %38, %39 : vector<8x9xf32>
    %c0_10 = arith.constant 0 : index
    %41 = memref.load %arg4[%c0_10] : memref<4xf32, #tpu.memory_space<smem>>
    %42 = arith.mulf %40, %33 : vector<8x9xf32>
    %43 = vector.shape_cast %42 : vector<8x9xf32> to vector<1x8x9xf32>
    %cst_11 = arith.constant dense<0.000000e+00> : vector<1xf32>
    %44 = vector.multi_reduction <add>, %43, %cst_11 [1, 2] : vector<1x8x9xf32> to vector<1xf32>
    %45 = vector.shape_cast %44 : vector<1xf32> to vector<1x1x1xf32>
    %46 = vector.extract %45[0, 0, 0] : f32 from vector<1x1x1xf32>
    %47 = arith.addf %41, %46 : f32
    %c0_12 = arith.constant 0 : index
    %48 = memref.load %arg4[%c0_12] : memref<4xf32, #tpu.memory_space<smem>>
    memref.store %47, %arg4[%c0_12] : memref<4xf32, #tpu.memory_space<smem>>
    %49 = vector.broadcast %8 : vector<8x1xf32> to vector<8x9xf32>
    %50 = arith.mulf %3, %49 : vector<8x9xf32>
    %c1 = arith.constant 1 : index
    %51 = memref.load %arg4[%c1] : memref<4xf32, #tpu.memory_space<smem>>
    %52 = vector.shape_cast %50 : vector<8x9xf32> to vector<1x8x9xf32>
    %cst_13 = arith.constant dense<0.000000e+00> : vector<1xf32>
    %53 = vector.multi_reduction <add>, %52, %cst_13 [1, 2] : vector<1x8x9xf32> to vector<1xf32>
    %54 = vector.shape_cast %53 : vector<1xf32> to vector<1x1x1xf32>
    %55 = vector.extract %54[0, 0, 0] : f32 from vector<1x1x1xf32>
    %56 = arith.addf %51, %55 : f32
    %c1_14 = arith.constant 1 : index
    %57 = memref.load %arg4[%c1_14] : memref<4xf32, #tpu.memory_space<smem>>
    memref.store %56, %arg4[%c1_14] : memref<4xf32, #tpu.memory_space<smem>>
    %c2 = arith.constant 2 : index
    %58 = memref.load %arg4[%c2] : memref<4xf32, #tpu.memory_space<smem>>
    %59 = arith.mulf %50, %50 : vector<8x9xf32>
    %60 = vector.shape_cast %59 : vector<8x9xf32> to vector<1x8x9xf32>
    %cst_15 = arith.constant dense<0.000000e+00> : vector<1xf32>
    %61 = vector.multi_reduction <add>, %60, %cst_15 [1, 2] : vector<1x8x9xf32> to vector<1xf32>
    %62 = vector.shape_cast %61 : vector<1xf32> to vector<1x1x1xf32>
    %63 = vector.extract %62[0, 0, 0] : f32 from vector<1x1x1xf32>
    %64 = arith.addf %58, %63 : f32
    %c2_16 = arith.constant 2 : index
    %65 = memref.load %arg4[%c2_16] : memref<4xf32, #tpu.memory_space<smem>>
    memref.store %64, %arg4[%c2_16] : memref<4xf32, #tpu.memory_space<smem>>
    %c3 = arith.constant 3 : index
    %66 = memref.load %arg4[%c3] : memref<4xf32, #tpu.memory_space<smem>>
    %67 = arith.mulf %13, %3 : vector<8x9xf32>
    %68 = vector.shape_cast %67 : vector<8x9xf32> to vector<1x8x9xf32>
    %cst_17 = arith.constant dense<0.000000e+00> : vector<1xf32>
    %69 = vector.multi_reduction <add>, %68, %cst_17 [1, 2] : vector<1x8x9xf32> to vector<1xf32>
    %70 = vector.shape_cast %69 : vector<1xf32> to vector<1x1x1xf32>
    %71 = vector.extract %70[0, 0, 0] : f32 from vector<1x1x1xf32>
    %72 = arith.addf %66, %71 : f32
    %c3_18 = arith.constant 3 : index
    %73 = memref.load %arg4[%c3_18] : memref<4xf32, #tpu.memory_space<smem>>
    memref.store %72, %arg4[%c3_18] : memref<4xf32, #tpu.memory_space<smem>>
    %c2_i32 = arith.constant 2 : i32
    %74 = arith.cmpi eq, %arg0, %c2_i32 : i32
    %75 = arith.extui %74 : i1 to i32
    %c0_i32_19 = arith.constant 0 : i32
    %76 = arith.cmpi ne, %75, %c0_i32_19 : i32
    scf.if %76 {
      %cst_20 = arith.constant 2.400000e+01 : f32
      %cst_21 = arith.constant 9.000000e+00 : f32
      %77 = arith.mulf %cst_20, %cst_21 : f32
      %c0_22 = arith.constant 0 : index
      %78 = memref.load %arg4[%c0_22] : memref<4xf32, #tpu.memory_space<smem>>
      %c1_23 = arith.constant 1 : index
      %79 = memref.load %arg4[%c1_23] : memref<4xf32, #tpu.memory_space<smem>>
      %c2_24 = arith.constant 2 : index
      %80 = memref.load %arg4[%c2_24] : memref<4xf32, #tpu.memory_space<smem>>
      %c3_25 = arith.constant 3 : index
      %81 = memref.load %arg4[%c3_25] : memref<4xf32, #tpu.memory_space<smem>>
      %cst_26 = arith.constant 0.000000e+00 : f32
      %82 = arith.subf %cst_26, %78 : f32
      %cst_27 = arith.constant 2.400000e+01 : f32
      %83 = arith.divf %82, %cst_27 : f32
      %cst_28 = arith.constant 9.000000e+00 : f32
      %84 = arith.divf %79, %cst_28 : f32
      %85 = arith.subf %81, %84 : f32
      %86 = arith.mulf %79, %79 : f32
      %87 = arith.divf %86, %77 : f32
      %88 = arith.subf %80, %87 : f32
      %cst_29 = arith.constant 1.000000e+00 : f32
      %cst_30 = arith.constant 9.000000e+00 : f32
      %89 = arith.divf %cst_29, %cst_30 : f32
      %cst_31 = arith.constant 1.000000e+00 : f32
      %90 = arith.subf %cst_31, %89 : f32
      %cst_32 = arith.constant 2.400000e+01 : f32
      %91 = arith.mulf %cst_32, %90 : f32
      %92 = math.rsqrt %88 : f32
      %93 = arith.mulf %85, %92 : f32
      %94 = math.rsqrt %91 : f32
      %95 = arith.mulf %93, %94 : f32
      %cst_33 = arith.constant 0.000000e+00 : f32
      %96 = arith.subf %cst_33, %95 : f32
      %cst_34 = arith.constant 3.000000e-01 : f32
      %97 = arith.mulf %cst_34, %96 : f32
      %98 = arith.addf %83, %97 : f32
      %c0_35 = arith.constant 0 : index
      %c0_36 = arith.constant 0 : index
      %99 = memref.load %arg3[%c0_35, %c0_36] : memref<1x1xf32, #tpu.memory_space<smem>>
      memref.store %98, %arg3[%c0_35, %c0_36] : memref<1x1xf32, #tpu.memory_space<smem>>
    } else {
    }
    return
  }
  func.func @transform_0(%arg0: i32) -> (i32, i32) {
    %c0_i32 = arith.constant 0 : i32
    %c0_i32_0 = arith.constant 0 : i32
    return %arg0, %c0_i32 : i32, i32
  }
  func.func @transform_1(%arg0: i32) -> (i32, i32) {
    %c0_i32 = arith.constant 0 : i32
    %c0_i32_0 = arith.constant 0 : i32
    return %arg0, %c0_i32 : i32, i32
  }
  func.func @transform_2(%arg0: i32) -> (i32, i32) {
    %c0_i32 = arith.constant 0 : i32
    %c0_i32_0 = arith.constant 0 : i32
    %c0_i32_1 = arith.constant 0 : i32
    return %c0_i32, %c0_i32_0 : i32, i32
  }
}

</mosaic_0001>

<bundles_post_ra>
// kernel: tpu_custom_call.1
= control target key start
LH: loop header
LB: loop body
LE: loop exit
PB: predicated region body
PF: predicated region fallthrough
CT: control target
= control target key end

     0   :  { %7 = vsyncpa [#allocation4], 0  ;;  %s457_s9 = smov 0   ;;  %s490_s0 = inlined_call_operand.vmem [shape: f32[24,9], index: 0, kind: input, shape index: {}]   ;;  %s491_s1 = inlined_call_operand.vmem [shape: s32[24,1], index: 1, kind: input, shape index: {}]   ;;  %s492_s2 = inlined_call_operand.hbm [shape: f32[1,1], index: 2, kind: output, shape index: {}]  }
   0x1 LB: > { %s463_s10 = sadd.s32 4294967295, %s436_s9   ;;  %p355_p0 = scmp.ge.s32.totalorder %s436_s9, 1  ;;  %s436_s9 = sphi %s457_s9, %s13_s9  }
   0x2   : > { %p116_p1 = scmp.lt.s32.totalorder %s436_s9, 4 }
   0x4   : > { %p117_p2 = pnand %p355_p0, %p116_p1 }
   0x5   : > { %p136_p3 = scmp.lt.s32.totalorder (!%p117_p2), %s463_s10, 2  ;;  %p391_p4 = scmp.eq.s32.totalorder (!%p117_p2), %s463_s10, 0 }
   0x6   : > { %120 = sbr.rel (%p117_p2) target bundleno = 637 (0x27d), region = 28  ;;  %s440_s19 = smov (!%p117_p2), 0.0  }
   0x7   : > { %p364_p5 = scmp.ne.s32.totalorder (!%p117_p2), %s463_s10, 2 }
   0xb   : > { %v438_v0 = vmov 0   ;;  %s137_s11 = scalar_select %p136_p3, %s463_s10, 2  ;;  %vm181_vm0 = vcmask 72704   ;;  %v439_v10 = vmov 0.0   ;;  %v161_v12 = vlaneseq }
   0xc   : > { %406 = vset.pattern.permute.xlu0 %v438_v0  ;;  %407 = vset.pattern.permute.xlu1 %v438_v0  ;;  %383 = sst [smem:[#allocation2]] (%p391_p4), %s440_s19 }
   0xd   : > { %s356_s12 = sshll.u32 %s137_s11, 3  ;;  %v162_v13 = vand.u32 127, %v161_v12  ;;  %384 = sst [smem:[#allocation2 + $0x1]] (%p391_p4), %s440_s19 }
   0xe   : > { %s139_s15 = scalar_lea.vmem %s490_s0, %s356_s12  ;;  %s143_s18 = scalar_lea.vmem %s491_s1, %s356_s12 }
   0xf   : > { %v156_v1 = vld [vmem:[%s139_s15] sm:$0xff]  ;;  %v169_v14 = vcvt.s32.f32 %v162_v13  ;;  %385 = sst [smem:[#allocation2 + $0x2]] (%p391_p4), %s440_s19 }
  0x10   : > { %v157_v2 = vld [vmem:[%s143_s18] sm:$0xff]  ;;  %v182_v3 = vsel %vm181_vm0, %v156_v1, -inf  ;;  %386 = sst [smem:[#allocation2 + $0x3]] (%p391_p4), %s440_s19 }
  0x11   : > { %164 = vperm.xlu1 %407, %v157_v2   ;;  %183 = vmax.xlane.f32.xlu0 %v182_v3  ;;  %v170_v4 = vcvt.s32.f32 %v157_v2  ;;  %vm158_vm1 = vcmp.ge.s32.totalorder %v157_v2, 0  ;;  %s204_s20 = sld [smem:[#allocation2]] }
  0x12   : > { %v359_v11 = vsel %vm158_vm1, 1.0, %v439_v10  ;;  %s361_s21 = sld [smem:[#allocation2 + $0x1]] }
  0x13   : > { %s362_s22 = sld [smem:[#allocation2 + $0x2]] }
  0x14   : > { %s363_s23 = sld [smem:[#allocation2 + $0x3]] }
  0x27   : > { %173 = vperm.xlu0 %406, %v170_v4  }
  0x8c   : > { %v165_v20 = vpop.permute.xlu1 %164 }
  0x8d   : > { %vm166_vm2 = vcmp.eq.s32.totalorder %v162_v13, %v165_v20 }
  0x8e   : > { %v360_v28 = vsel %vm166_vm2, 1.0, %v439_v10 }
  0x8f   : > { %v195_v29 = vmul.f32 0.5, %v360_v28  ;;  %v250_v39 = vmul.f32 %v360_v28, %v156_v1 }
  0x91   : > { %v251_v40 = vsel %vm181_vm0, %v250_v39, 0.0 }
  0x9a   : > { %v184_v5 = vpop.xlane.xlu0 %183 }
  0x9b   : > { %v185_v6 = vsub.f32 %v156_v1, %v184_v5 }
  0x9d   : > { %v186_v7 = vmul.f32 1.442695, %v185_v6 }
  0x9f   : > { %408 = vpow2.f32 %v186_v7 }
  0xa2   : > { %v174_v15 = vpop.permute.xlu0 %173 }
  0xa3   : > { %v176_v16 = vsub.f32 %v169_v14, %v174_v15 }
  0xa5   : > { %v177_v17 = vand.u32 2147483647, %v176_v16 }
  0xa7   : > { %v178_v18 = vmul.f32 -0.2, %v177_v17 }
  0xa9   : > { %v179_v19 = vmul.f32 1.442695, %v178_v18 }
  0xab   : > { %410 = vpow2.f32 %v179_v19 }
  0xac   : > { %v409_v8 = vpop.eup %408 }
  0xad   : > { %v188_v9 = vsel %vm181_vm0, %v409_v8, 0.0 }
  0xae   : > { %189 = vadd.xlane.f32.xlu1 %v188_v9 }
  0xb8   : > { %v411_v27 = vpop.eup %410 }
  0xb9   : > { %v196_v30 = vmul.f32 0.2, %v411_v27 }
  0xbb   : > { %v197_v34 = vadd.f32 %v196_v30, %v195_v29 }
  0xbf   : > { %200 = vperm.xlu1 %407, %v359_v11  }
 0x137   : > { %v190_v21 = vpop.xlane.xlu1 %189 }
 0x138   : > { %412 = vlog2.f32 %v190_v21 }
 0x13b   : > { %v201_v22 = vpop.permute.xlu1 %200 }
 0x13c   : > { %v219_v23 = vmul.f32 %v201_v22, %v156_v1  ;;  %v203_v35 = vmul.f32 %v201_v22, %v197_v34 }
 0x13e   : > { %v221_v24 = vsel %vm181_vm0, %v219_v23, 0.0  ;;  %v235_v25 = vmul.f32 %v219_v23, %v219_v23 }
 0x13f   : > { %222 = vadd.xlane.f32.xlu0 %v221_v24 }
 0x140   : > { %v236_v26 = vsel %vm181_vm0, %v235_v25, 0.0 }
 0x141   : > { %237 = vadd.xlane.f32.xlu1 %v236_v26 }
 0x145   : > { %v413_v31 = vpop.eup %412 }
 0x146   : > { %v192_v32 = vmul.f32 0.6931472, %v413_v31 }
 0x148   : > { %v193_v33 = vadd.f32 %v192_v32, %v184_v5 }
 0x14a   : > { %v194_v36 = vsub.f32 %v156_v1, %v193_v33 }
 0x14c   : > { %v205_v37 = vmul.f32 %v203_v35, %v194_v36 }
 0x14e   : > { %v206_v38 = vsel %vm181_vm0, %v205_v37, 0.0 }
 0x14f   : > { %207 = vadd.xlane.f32.xlu1 %v206_v38 }
 0x153   : > { %252 = vadd.xlane.f32.xlu1 %v251_v40 }
 0x1c8   : > { %v223_v41 = vpop.xlane.xlu0 %222 }
 0x1c9   : > { %v224_v43 = vrot.slane %v223_v41, 4 }
 0x1ca   : > { %v238_v42 = vpop.xlane.xlu1 %237 }
 0x1cb   : > { %v239_v44 = vrot.slane %v238_v42, 4  ;;  %v225_v45 = vadd.f32 %v224_v43, %v223_v41 }
 0x1cd   : > { %v240_v46 = vadd.f32 %v239_v44, %v238_v42  ;;  %v226_v47 = vrot.slane %v225_v45, 2 }
 0x1cf   : > { %v241_v49 = vrot.slane %v240_v46, 2  ;;  %v227_v52 = vadd.f32 %v226_v47, %v225_v45 }
 0x1d1   : > { %v242_v56 = vadd.f32 %v241_v49, %v240_v46  ;;  %v228_v59 = vrot.slane %v227_v52, 1 }
 0x1d3   : > { %v243_v62 = vrot.slane %v242_v56, 1  ;;  %v229_v1 = vadd.f32 %v228_v59, %v227_v52 }
 0x1d5   : > { %v244_v2 = vadd.f32 %v243_v62, %v242_v56 }
 0x1d8   : > { %v208_v48 = vpop.xlane.xlu1 %207 }
 0x1d9   : > { %v209_v50 = vrot.slane %v208_v48, 4 }
 0x1db   : > { %v210_v51 = vadd.f32 %v209_v50, %v208_v48 }
 0x1dc   : > { %v253_v53 = vpop.xlane.xlu1 %252 }
 0x1dd   : > { %v211_v54 = vrot.slane %v210_v51, 2  ;;  %v254_v55 = vrot.slane %v253_v53, 4 }
 0x1df   : > { %v255_v57 = vadd.f32 %v254_v55, %v253_v53  ;;  %v212_v58 = vadd.f32 %v211_v54, %v210_v51 }
 0x1e1   : > { %v256_v60 = vrot.slane %v255_v57, 2  ;;  %v213_v61 = vrot.slane %v212_v58, 1 }
 0x1e3   : > { %v257_v63 = vadd.f32 %v256_v60, %v255_v57  ;;  %v214_v0 = vadd.f32 %v213_v61, %v212_v58 }
 0x1e5   : > { %372 = vpush %v214_v0  ;;  %v258_v3 = vrot.slane %v257_v63, 1 }
 0x1e6   : > { %374 = vpush %v229_v1 }
 0x1e7   : > { %376 = vpush %v244_v2  ;;  %v259_v4 = vadd.f32 %v258_v3, %v257_v63 }
 0x1e9   : > { %378 = vpush %v259_v4 }
 0x216   : > { %s373_s24 = spop %372 }
 0x217   : > { %s216_s25 = sadd.f32 %s373_s24, %s204_s20  ;;  %s375_s26 = spop %374 }
 0x218   : > { %s231_s27 = sadd.f32 %s375_s26, %s361_s21  ;;  %s377_s28 = spop %376 }
 0x219   : > { %218 = sst [smem:[#allocation2]] %s216_s25 }
 0x21a   : > { %233 = sst [smem:[#allocation2 + $0x1]] %s231_s27  ;;  %s379_s29 = spop %378 }
 0x21b   : > { %s246_s30 = sadd.f32 %s377_s28, %s362_s22  ;;  %267 = sbr.rel (%p364_p5) target bundleno = 631 (0x277), region = 36 }
 0x21c   : > { %s261_s3 = sadd.f32 %s379_s29, %s363_s23 }
 0x21d   : > { %248 = sst [smem:[#allocation2 + $0x2]] %s246_s30 }
 0x21e   : > { %263 = sst [smem:[#allocation2 + $0x3]] %s261_s3 }
 0x21f   : > { %s365_s4 = sld [smem:[#allocation2 + $0x1]] (!%p364_p5) }
 0x220   : > { %s366_s5 = sld [smem:[#allocation2 + $0x2]] }
 0x221   : > { %s367_s11 = sld [smem:[#allocation2 + $0x3]] }
 0x222   : > { %s268_s12 = sld [smem:[#allocation2]] }
 0x225   : > { %s280_s6 = smul.f32 %s365_s4, %s365_s4 }
 0x226   : > { %s278_s13 = smul.f32 0.11111111, %s365_s4 }
 0x227   : > { %s283_s7 = smul.f32 0.0046296297, %s280_s6 }
 0x228   : > { %s279_s14 = ssub.f32 %s367_s11, %s278_s13 }
 0x229   : > { %s284_s8 = ssub.f32 %s366_s5, %s283_s7 }
 0x22a   : > { %s272_s16 = ssub.f32 0.0, %s268_s12 }
 0x22b   : > { %v285_v5 = vstv %s284_s8 }
 0x22c   : > { %414 = vrsqrt.f32 %v285_v5  ;;  %s275_s19 = smul.f32 0.041666668, %s272_s16 }
 0x239   : > { %v415_v6 = vpop.eup %414 }
 0x23a   : > { %380 = vpush %v415_v6 }
 0x26b   : > { %s381_s15 = spop %380 }
 0x26c   : > { %s288_s17 = smul.f32 %s381_s15, %s279_s14 }
 0x26e   : > { %s289_s18 = smul.f32 0.21650636, %s288_s17 }
 0x270   : > { %s290_s20 = ssub.f32 0.0, %s289_s18 }
 0x272   : > { %s291_s21 = smul.f32 0.3, %s290_s20 }
 0x274   : > { %s292_s22 = sadd.f32 %s291_s21, %s275_s19 }
 0x276   : > { %294 = sst [smem:[#allocation3]] %s292_s22 }
 0x277 PF: > { %p392_p6 = scmp.eq.s32.totalorder %s463_s10, 2  ;;  %s441_s23 = smov [#allocation3]  }
 0x279   : > { %388 = dma.smem_to_hbm (%p392_p6), %s441_s23, 16, %s492_s2, [#allocation4]  }
 0x27a   : > { %431 = dma.done.wait (%p392_p6), [#allocation4], 16  }
 0x27b   : > { %433 = vsyncadd (%p392_p6), [#allocation4], 4294967280 }
 0x27c   : > { %308 = sfence }
 0x27d PF: > { %s13_s9 = sadd.s32 1, %s436_s9  }
 0x27e   : > { %p10_p7 = scmp.ge.s32.totalorder %s13_s9, 5  }
 0x280   :  { %12 = sbr.rel (!%p10_p7) target bundleno = 1 (0x1), region = 75 }
 0x285   :  { %314 = vsyncpa [#allocation4], 1 }
 0x286   :  { %316 = vsyncpa [#allocation4 + $0x1], 1 }

</bundles_post_ra>
